<compile_context>
chip_gen: v6e
topology: v6e:2x2x1
jax: 0.10.0
libtpu: 0.0.40
codegen_flags: <defaults>
</compile_context>

<pallas_src>
import functools

import jax
import jax.numpy as jnp
from jax.experimental import pallas as pl
from jax.experimental.pallas import tpu as pltpu

_LANE = 128
_SUBLANE = 8


def _round_up(x, m):
    return ((x + m - 1) // m) * m


@functools.lru_cache(maxsize=1)
def _num_tensorcores():
    """Best-effort TensorCores-per-chip detection (v7x=2, v5e/v6e=1)."""
    try:
        info = pltpu.get_tpu_info()
        for name in ("num_cores", "num_tensorcores", "tensorcores_per_chip",
                     "cores_per_chip"):
            n = getattr(info, name, None)
            if isinstance(n, int) and n > 0:
                return n
    except Exception:
        pass
    try:
        kind = str(getattr(jax.devices()[0], "device_kind", "")).lower()
        if "v7" in kind:
            return 2
    except Exception:
        pass
    return 1


def _softplus(v):
    # Matches torch.nn.Softplus(beta=1, threshold=20): linear above threshold.
    # exp's argument is clamped so the (discarded) branch never produces inf.
    return jnp.where(v > 20.0, v, jnp.log1p(jnp.exp(jnp.minimum(v, 20.0))))


def mlp_kernel(x_ref, w1_ref, b1_ref, w2_ref, b2_ref, w3_ref, b3_ref,
               w4_ref, b4_ref, o_ref, *, chunk_rows):
    # Fully fused 4-layer MLP on one batch tile.  The tile is processed in
    # <=128-row chunks (static slices -> zero-cost ref views) so consecutive
    # chunks' EUP softplus and MXU matmuls can overlap, and the per-chunk f32
    # intermediates stay small.  Matmul operand dtype follows the weights
    # (f32, or bf16 by default); accumulation, bias-add and softplus are f32.
    w1 = w1_ref[...]; b1 = b1_ref[...]
    w2 = w2_ref[...]; b2 = b2_ref[...]
    w3 = w3_ref[...]; b3 = b3_ref[...]
    w4 = w4_ref[...]; b4 = b4_ref[...]
    block_b = x_ref.shape[0]
    for s in range(0, block_b, chunk_rows):
        rows = min(chunk_rows, block_b - s)
        x = x_ref[s:s + rows, :].astype(w1.dtype)
        h = _softplus(
            jnp.dot(x, w1, preferred_element_type=jnp.float32) + b1)
        h = _softplus(
            jnp.dot(h.astype(w2.dtype), w2,
                    preferred_element_type=jnp.float32) + b2)
        h = _softplus(
            jnp.dot(h.astype(w3.dtype), w3,
                    preferred_element_type=jnp.float32) + b3)
        out = (jnp.dot(h.astype(w4.dtype), w4,
                       preferred_element_type=jnp.float32) + b4)
        o_ref[s:s + rows, :] = out.astype(o_ref.dtype)


@functools.partial(jax.jit,
                   static_argnames=("block_b", "use_bf16_matmul", "num_tc"))
def pileup_nn_parameter_estimator(x, params, *, block_b=512,
                                  use_bf16_matmul=True, num_tc=None):
    """x: (B, D_in) float32.  params: dict of (w1,b1,...,w4,b4)."""
    if num_tc is None:
        num_tc = _num_tensorcores()

    B, d_in = x.shape
    w1, b1 = params["w1"], params["b1"]
    w2, b2 = params["w2"], params["b2"]
    w3, b3 = params["w3"], params["b3"]
    w4, b4 = params["w4"], params["b4"]
    hidden = w1.shape[1]
    d_out = w4.shape[1]

    # ---- lane-dense output: pad the final layer to 128 lanes ---------------
    d_out_pad = _round_up(d_out, _LANE)
    if d_out_pad != d_out:
        w4 = jnp.pad(w4, ((0, 0), (0, d_out_pad - d_out)))
        b4 = jnp.pad(b4, ((0, 0), (0, d_out_pad - d_out)))

    # ---- bf16 MXU operands (all generations are bf16-native); biases f32 ----
    if use_bf16_matmul:
        w1, w2, w3, w4 = (w.astype(jnp.bfloat16) for w in (w1, w2, w3, w4))
    w_itemsize = 2 if use_bf16_matmul else 4

    # ---- batch tiling --------------------------------------------------------
    # 1) block count from the requested tile size; force an even >=2 split
    #    only on multi-TC chips (v7x) and only when the batch is big enough
    #    to amortize the per-TC weight DMA + step overhead.
    req_block_b = max(int(block_b), _SUBLANE)
    n_blocks = pl.cdiv(B, req_block_b)
    if num_tc > 1 and B >= 512:
        n_blocks = max(2, n_blocks)
        n_blocks += n_blocks % 2
    n_blocks = max(1, n_blocks)
    # 2) recompute the actual tile from the final block count -> minimal pad.
    block_b = max(_SUBLANE, _round_up(pl.cdiv(B, n_blocks), _SUBLANE))
    b_pad = n_blocks * block_b
    if b_pad != B:
        x = jnp.pad(x, ((0, b_pad - B), (0, 0)))

    # In-kernel sub-tile size (rows per fc1->fc4 chain).
    chunk_rows = min(block_b, 128)

    weight_bytes = (w_itemsize * (d_in * hidden + 2 * hidden * hidden
                                  + hidden * d_out_pad)
                    + 4 * (3 * hidden + d_out_pad))
    cost = pl.CostEstimate(
        flops=int(2 * b_pad * (d_in * hidden + 2 * hidden * hidden
                               + hidden * d_out_pad)),
        transcendentals=int(2 * 3 * b_pad * hidden),
        bytes_accessed=int(4 * b_pad * (d_in + d_out_pad) + weight_bytes),
    )

    # Only raise the scoped-VMEM limit if an unusually large tile is requested
    # (v5e's default scoped limit is 16 MiB); normal tiles are ~1 MiB.
    vmem_est = (2 * block_b * d_in * 4            # x tile, double-buffered
                + 2 * block_b * d_out_pad * 4     # out tile, double-buffered
                + 2 * weight_bytes                # weights/biases
                + 6 * chunk_rows * hidden * 4)    # live f32 intermediates
    cp_kwargs = dict(dimension_semantics=("parallel",))
    if vmem_est > 12 * 1024 * 1024:
        cp_kwargs["vmem_limit_bytes"] = int(min(vmem_est * 2,
                                                110 * 1024 * 1024))

    def rep2(i):  # grid-invariant weights/biases: constant block index
        return (0, 0)

    out = pl.pallas_call(
        functools.partial(mlp_kernel, chunk_rows=chunk_rows),
        out_shape=jax.ShapeDtypeStruct((b_pad, d_out_pad), jnp.float32),
        grid_spec=pltpu.PrefetchScalarGridSpec(
            num_scalar_prefetch=0,
            grid=(n_blocks,),
            in_specs=[
                pl.BlockSpec((block_b, d_in), lambda i: (i, 0)),   # x tile
                pl.BlockSpec((d_in, hidden), rep2),                # w1
                pl.BlockSpec((1, hidden), rep2),                   # b1
                pl.BlockSpec((hidden, hidden), rep2),              # w2
                pl.BlockSpec((1, hidden), rep2),                   # b2
                pl.BlockSpec((hidden, hidden), rep2),              # w3
                pl.BlockSpec((1, hidden), rep2),                   # b3
                pl.BlockSpec((hidden, d_out_pad), rep2),           # w4 (padded)
                pl.BlockSpec((1, d_out_pad), rep2),                # b4 (padded)
            ],
            out_specs=pl.BlockSpec((block_b, d_out_pad), lambda i: (i, 0)),
        ),
        compiler_params=pltpu.CompilerParams(**cp_kwargs),
        cost_estimate=cost,
    )(x, w1, b1, w2, b2, w3, b3, w4, b4)

    return out[:B, :d_out]


def init_params(key, d_in, hidden, d_out):
    """Deterministic init mimicking torch.nn.Linear defaults (U(-k,k), k=1/sqrt(fan_in))."""
    dims = [(d_in, hidden), (hidden, hidden), (hidden, hidden), (hidden, d_out)]
    params = {}
    for idx, (fi, fo) in enumerate(dims, start=1):
        key, kw, kb = jax.random.split(key, 3)
        bound = 1.0 / jnp.sqrt(float(fi))
        params[f"w{idx}"] = jax.random.uniform(
            kw, (fi, fo), jnp.float32, minval=-bound, maxval=bound)
        params[f"b{idx}"] = jax.random.uniform(
            kb, (1, fo), jnp.float32, minval=-bound, maxval=bound)
    return params


def _reference(x, params, matmul_dtype=None):
    """Pure-JAX reference.  matmul_dtype=jnp.bfloat16 reproduces the kernel's
    bf16-operand / f32-accumulate math; None is the exact-f32 torch math."""
    h = x
    for i in (1, 2, 3, 4):
        w, b = params[f"w{i}"], params[f"b{i}"]
        if matmul_dtype is not None:
            h = jnp.dot(h.astype(matmul_dtype), w.astype(matmul_dtype),
                        preferred_element_type=jnp.float32) + b
        else:
            h = h @ w + b
        if i < 4:
            h = jax.nn.softplus(h)
    return h


if __name__ == "__main__":
    # Shapes consistent with the module: hidden_size=128 (spec default),
    # small input/output parameter dims.
    B, D_IN, HIDDEN, D_OUT = 16, 8, 128, 4

    key = jax.random.PRNGKey(0)
    key, kx, kx2 = jax.random.split(key, 3)
    params = init_params(key, D_IN, HIDDEN, D_OUT)
    x = jax.random.normal(kx, (B, D_IN), dtype=jnp.float32)

    # Exact-f32 path (torch-equivalent numerics), tight tolerance.
    out_f32 = jax.block_until_ready(
        pileup_nn_parameter_estimator(x, params, use_bf16_matmul=False))
    ref_f32 = _reference(x, params)
    assert out_f32.shape == (B, D_OUT)
    assert jnp.allclose(out_f32, ref_f32, atol=1e-4, rtol=1e-4)

    # Default path (bf16 MXU operands, f32 accumulation) on the small batch:
    # compare against the matching bf16-operand reference (tight) and the f32
    # reference (loose sanity check).
    out_bf = jax.block_until_ready(pileup_nn_parameter_estimator(x, params))
    ref_bf = _reference(x, params, matmul_dtype=jnp.bfloat16)
    assert out_bf.shape == (B, D_OUT)
    assert jnp.allclose(out_bf, ref_bf, atol=5e-3, rtol=5e-3)
    assert jnp.allclose(out_bf, ref_f32, atol=1e-1, rtol=1e-1)

    # Ragged batch just over a tile multiple (exercises the recomputed-tile
    # path and the multi-chunk in-kernel loop: 264-row tile -> 128/128/8).
    B2 = 260
    x2 = jax.random.normal(kx2, (B2, D_IN), dtype=jnp.float32)
    out2 = jax.block_until_ready(pileup_nn_parameter_estimator(x2, params))
    ref2 = _reference(x2, params, matmul_dtype=jnp.bfloat16)
    assert out2.shape == (B2, D_OUT)
    assert jnp.allclose(out2, ref2, atol=5e-3, rtol=5e-3)

    print("KERNEL_OK")
</pallas_src>

<mosaic_0001>
module attributes {stable_mosaic.version = 11 : i64} {
  func.func @mlp_kernel(%arg0: i32, %arg1: memref<16x8xf32, #tpu.memory_space<vmem>>, %arg2: memref<8x128xf32, #tpu.memory_space<vmem>>, %arg3: memref<1x128xf32, #tpu.memory_space<vmem>>, %arg4: memref<128x128xf32, #tpu.memory_space<vmem>>, %arg5: memref<1x128xf32, #tpu.memory_space<vmem>>, %arg6: memref<128x128xf32, #tpu.memory_space<vmem>>, %arg7: memref<1x128xf32, #tpu.memory_space<vmem>>, %arg8: memref<128x128xf32, #tpu.memory_space<vmem>>, %arg9: memref<1x128xf32, #tpu.memory_space<vmem>>, %arg10: memref<16x128xf32, #tpu.memory_space<vmem>>) attributes {dimension_semantics = [#tpu.dimension_semantics<parallel>], iteration_bounds = array<i64: 1>, scalar_prefetch = 0 : i64, scratch_operands = 0 : i64, tpu.core_type = #tpu.core_type<tc>, window_params = [{transform_indices = @transform_0, window_bounds = array<i64: 16, 8>}, {pipeline_mode = #tpu.pipeline_mode<synchronous>, transform_indices = @transform_1, window_bounds = array<i64: 8, 128>}, {pipeline_mode = #tpu.pipeline_mode<synchronous>, transform_indices = @transform_2, window_bounds = array<i64: 1, 128>}, {pipeline_mode = #tpu.pipeline_mode<synchronous>, transform_indices = @transform_3, window_bounds = array<i64: 128, 128>}, {pipeline_mode = #tpu.pipeline_mode<synchronous>, transform_indices = @transform_4, window_bounds = array<i64: 1, 128>}, {pipeline_mode = #tpu.pipeline_mode<synchronous>, transform_indices = @transform_5, window_bounds = array<i64: 128, 128>}, {pipeline_mode = #tpu.pipeline_mode<synchronous>, transform_indices = @transform_6, window_bounds = array<i64: 1, 128>}, {pipeline_mode = #tpu.pipeline_mode<synchronous>, transform_indices = @transform_7, window_bounds = array<i64: 128, 128>}, {pipeline_mode = #tpu.pipeline_mode<synchronous>, transform_indices = @transform_8, window_bounds = array<i64: 1, 128>}, {transform_indices = @transform_9, window_bounds = array<i64: 16, 128>}]} {
    %c0 = arith.constant 0 : index
    %c0_0 = arith.constant 0 : index
    %0 = vector.load %arg2[%c0, %c0_0] : memref<8x128xf32, #tpu.memory_space<vmem>>, vector<8x128xf32>
    %c0_1 = arith.constant 0 : index
    %c0_2 = arith.constant 0 : index
    %1 = vector.load %arg3[%c0_1, %c0_2] : memref<1x128xf32, #tpu.memory_space<vmem>>, vector<1x128xf32>
    %c0_3 = arith.constant 0 : index
    %c0_4 = arith.constant 0 : index
    %2 = vector.load %arg4[%c0_3, %c0_4] : memref<128x128xf32, #tpu.memory_space<vmem>>, vector<128x128xf32>
    %c0_5 = arith.constant 0 : index
    %c0_6 = arith.constant 0 : index
    %3 = vector.load %arg5[%c0_5, %c0_6] : memref<1x128xf32, #tpu.memory_space<vmem>>, vector<1x128xf32>
    %c0_7 = arith.constant 0 : index
    %c0_8 = arith.constant 0 : index
    %4 = vector.load %arg6[%c0_7, %c0_8] : memref<128x128xf32, #tpu.memory_space<vmem>>, vector<128x128xf32>
    %c0_9 = arith.constant 0 : index
    %c0_10 = arith.constant 0 : index
    %5 = vector.load %arg7[%c0_9, %c0_10] : memref<1x128xf32, #tpu.memory_space<vmem>>, vector<1x128xf32>
    %c0_11 = arith.constant 0 : index
    %c0_12 = arith.constant 0 : index
    %6 = vector.load %arg8[%c0_11, %c0_12] : memref<128x128xf32, #tpu.memory_space<vmem>>, vector<128x128xf32>
    %c0_13 = arith.constant 0 : index
    %c0_14 = arith.constant 0 : index
    %7 = vector.load %arg9[%c0_13, %c0_14] : memref<1x128xf32, #tpu.memory_space<vmem>>, vector<1x128xf32>
    %c0_15 = arith.constant 0 : index
    %c0_16 = arith.constant 0 : index
    %8 = vector.load %arg1[%c0_15, %c0_16] : memref<16x8xf32, #tpu.memory_space<vmem>>, vector<16x8xf32>
    %cst = arith.constant dense<0.000000e+00> : vector<16x128xf32>
    %9 = tpu.matmul %8, %0, %cst {dimension_numbers = #tpu.dot_dimension_numbers<[1], [0], [0], [1], [0, 0, 1, 1], [], []>} : vector<16x8xf32>, vector<8x128xf32>, vector<16x128xf32> -> vector<16x128xf32>
    %10 = vector.broadcast %1 : vector<1x128xf32> to vector<16x128xf32>
    %11 = arith.addf %9, %10 : vector<16x128xf32>
    %cst_17 = arith.constant 2.000000e+01 : f32
    %12 = vector.broadcast %cst_17 : f32 to vector<16x128xf32>
    %13 = arith.cmpf ogt, %11, %12 : vector<16x128xf32>
    %cst_18 = arith.constant 2.000000e+01 : f32
    %14 = vector.broadcast %cst_18 : f32 to vector<16x128xf32>
    %15 = arith.minimumf %11, %14 : vector<16x128xf32>
    %16 = math.exp %15 : vector<16x128xf32>
    %17 = math.log1p %16 : vector<16x128xf32>
    %18 = arith.select %13, %11, %17 : vector<16x128xi1>, vector<16x128xf32>
    %cst_19 = arith.constant dense<0.000000e+00> : vector<16x128xf32>
    %19 = tpu.matmul %18, %2, %cst_19 {dimension_numbers = #tpu.dot_dimension_numbers<[1], [0], [0], [1], [0, 0, 1, 1], [], []>} : vector<16x128xf32>, vector<128x128xf32>, vector<16x128xf32> -> vector<16x128xf32>
    %20 = vector.broadcast %3 : vector<1x128xf32> to vector<16x128xf32>
    %21 = arith.addf %19, %20 : vector<16x128xf32>
    %cst_20 = arith.constant 2.000000e+01 : f32
    %22 = vector.broadcast %cst_20 : f32 to vector<16x128xf32>
    %23 = arith.cmpf ogt, %21, %22 : vector<16x128xf32>
    %cst_21 = arith.constant 2.000000e+01 : f32
    %24 = vector.broadcast %cst_21 : f32 to vector<16x128xf32>
    %25 = arith.minimumf %21, %24 : vector<16x128xf32>
    %26 = math.exp %25 : vector<16x128xf32>
    %27 = math.log1p %26 : vector<16x128xf32>
    %28 = arith.select %23, %21, %27 : vector<16x128xi1>, vector<16x128xf32>
    %cst_22 = arith.constant dense<0.000000e+00> : vector<16x128xf32>
    %29 = tpu.matmul %28, %4, %cst_22 {dimension_numbers = #tpu.dot_dimension_numbers<[1], [0], [0], [1], [0, 0, 1, 1], [], []>} : vector<16x128xf32>, vector<128x128xf32>, vector<16x128xf32> -> vector<16x128xf32>
    %30 = vector.broadcast %5 : vector<1x128xf32> to vector<16x128xf32>
    %31 = arith.addf %29, %30 : vector<16x128xf32>
    %cst_23 = arith.constant 2.000000e+01 : f32
    %32 = vector.broadcast %cst_23 : f32 to vector<16x128xf32>
    %33 = arith.cmpf ogt, %31, %32 : vector<16x128xf32>
    %cst_24 = arith.constant 2.000000e+01 : f32
    %34 = vector.broadcast %cst_24 : f32 to vector<16x128xf32>
    %35 = arith.minimumf %31, %34 : vector<16x128xf32>
    %36 = math.exp %35 : vector<16x128xf32>
    %37 = math.log1p %36 : vector<16x128xf32>
    %38 = arith.select %33, %31, %37 : vector<16x128xi1>, vector<16x128xf32>
    %cst_25 = arith.constant dense<0.000000e+00> : vector<16x128xf32>
    %39 = tpu.matmul %38, %6, %cst_25 {dimension_numbers = #tpu.dot_dimension_numbers<[1], [0], [0], [1], [0, 0, 1, 1], [], []>} : vector<16x128xf32>, vector<128x128xf32>, vector<16x128xf32> -> vector<16x128xf32>
    %40 = vector.broadcast %7 : vector<1x128xf32> to vector<16x128xf32>
    %41 = arith.addf %39, %40 : vector<16x128xf32>
    %c0_26 = arith.constant 0 : index
    %c0_27 = arith.constant 0 : index
    %42 = vector.load %arg10[%c0_26, %c0_27] : memref<16x128xf32, #tpu.memory_space<vmem>>, vector<16x128xf32>
    tpu.vector_store %arg10[%c0_26, %c0_27], %41 {strides = array<i32>} : memref<16x128xf32, #tpu.memory_space<vmem>>, vector<16x128xf32>,
    return
  }
  func.func @transform_0(%arg0: i32) -> (i32, i32) {
    %c0_i32 = arith.constant 0 : i32
    %c0_i32_0 = arith.constant 0 : i32
    return %arg0, %c0_i32 : i32, i32
  }
  func.func @transform_1(%arg0: i32) -> (i32, i32) {
    %c0_i32 = arith.constant 0 : i32
    %c0_i32_0 = arith.constant 0 : i32
    %c0_i32_1 = arith.constant 0 : i32
    return %c0_i32, %c0_i32_0 : i32, i32
  }
  func.func @transform_2(%arg0: i32) -> (i32, i32) {
    %c0_i32 = arith.constant 0 : i32
    %c0_i32_0 = arith.constant 0 : i32
    %c0_i32_1 = arith.constant 0 : i32
    return %c0_i32, %c0_i32_0 : i32, i32
  }
  func.func @transform_3(%arg0: i32) -> (i32, i32) {
    %c0_i32 = arith.constant 0 : i32
    %c0_i32_0 = arith.constant 0 : i32
    %c0_i32_1 = arith.constant 0 : i32
    return %c0_i32, %c0_i32_0 : i32, i32
  }
  func.func @transform_4(%arg0: i32) -> (i32, i32) {
    %c0_i32 = arith.constant 0 : i32
    %c0_i32_0 = arith.constant 0 : i32
    %c0_i32_1 = arith.constant 0 : i32
    return %c0_i32, %c0_i32_0 : i32, i32
  }
  func.func @transform_5(%arg0: i32) -> (i32, i32) {
    %c0_i32 = arith.constant 0 : i32
    %c0_i32_0 = arith.constant 0 : i32
    %c0_i32_1 = arith.constant 0 : i32
    return %c0_i32, %c0_i32_0 : i32, i32
  }
  func.func @transform_6(%arg0: i32) -> (i32, i32) {
    %c0_i32 = arith.constant 0 : i32
    %c0_i32_0 = arith.constant 0 : i32
    %c0_i32_1 = arith.constant 0 : i32
    return %c0_i32, %c0_i32_0 : i32, i32
  }
  func.func @transform_7(%arg0: i32) -> (i32, i32) {
    %c0_i32 = arith.constant 0 : i32
    %c0_i32_0 = arith.constant 0 : i32
    %c0_i32_1 = arith.constant 0 : i32
    return %c0_i32, %c0_i32_0 : i32, i32
  }
  func.func @transform_8(%arg0: i32) -> (i32, i32) {
    %c0_i32 = arith.constant 0 : i32
    %c0_i32_0 = arith.constant 0 : i32
    %c0_i32_1 = arith.constant 0 : i32
    return %c0_i32, %c0_i32_0 : i32, i32
  }
  func.func @transform_9(%arg0: i32) -> (i32, i32) {
    %c0_i32 = arith.constant 0 : i32
    %c0_i32_0 = arith.constant 0 : i32
    return %arg0, %c0_i32 : i32, i32
  }
}

</mosaic_0001>

<bundles_post_ra>
// kernel: pileup_nn_parameter_estimator.1
= control target key start
LH: loop header
LB: loop body
LE: loop exit
PB: predicated region body
PF: predicated region fallthrough
CT: control target
= control target key end

     0   :  { %vm93_vm0 = vcmask 64512   ;;  %s926_s1 = inlined_call_operand.vmem [shape: f32[8,128], index: 1, kind: input, shape index: {}]   ;;  %s927_s0 = inlined_call_operand.vmem [shape: f32[16,8], index: 0, kind: input, shape index: {}]   ;;  %s928_s3 = inlined_call_operand.vmem [shape: f32[128,128], index: 3, kind: input, shape index: {}]   ;;  %s929_s2 = inlined_call_operand.vmem [shape: f32[1,128], index: 2, kind: input, shape index: {}]   ;;  %s930_s5 = inlined_call_operand.vmem [shape: f32[128,128], index: 5, kind: input, shape index: {}]   ;;  %s931_s4 = inlined_call_operand.vmem [shape: f32[1,128], index: 4, kind: input, shape index: {}]   ;;  %s932_s7 = inlined_call_operand.vmem [shape: f32[128,128], index: 7, kind: input, shape index: {}]   ;;  %s933_s6 = inlined_call_operand.vmem [shape: f32[1,128], index: 6, kind: input, shape index: {}]   ;;  %s934_s8 = inlined_call_operand.vmem [shape: f32[1,128], index: 8, kind: input, shape index: {}]   ;;  %s935_s9 = inlined_call_operand.vmem [shape: f32[16,128], index: 9, kind: output, shape index: {}]  }
   0x1   :  { %v32_v0 = vld [vmem:[%s926_s1] sm:$0xff]  ;;  %v86_v2 = vld [vmem:[%s927_s0 + $0x8] sm:$0xff]  ;;  %v49_v3 = vld [vmem:[%s928_s3 + $0x78] sm:$0xff] }
   0x2   :  { %v85_v1 = vld [vmem:[%s927_s0] sm:$0xff]  ;;  %571 = vmatprep.subr.mxu0 %v32_v0  ;;  %v48_v4 = vld [vmem:[%s928_s3 + $0x70] sm:$0xff]  ;;  %576 = vmatprep.subr.mxu1 %v49_v3  ;;  %v47_v5 = vld [vmem:[%s928_s3 + $0x68] sm:$0xff] }
   0x3   :  { %573 = vmatprep.mubr.msk.f32.mxu0 %vm93_vm0, %v85_v1  ;;  %572 = vmatpush3.msra.mxu0 %v32_v0  ;;  %v46_v6 = vld [vmem:[%s928_s3 + $0x60] sm:$0xff]  ;;  %v45_v7 = vld [vmem:[%s928_s3 + $0x58] sm:$0xff]  ;;  %v44_v8 = vld [vmem:[%s928_s3 + $0x50] sm:$0xff] }
   0x4   :  { %574 = vmatmul.mubr.msk.f32.vlgmr.msra.gmra.mxu0 %vm93_vm0, %v86_v2  ;;  %577 = vmatpush3.msra.mxu1 %v49_v3  ;;  %v43_v9 = vld [vmem:[%s928_s3 + $0x48] sm:$0xff]  ;;  %v42_v10 = vld [vmem:[%s928_s3 + $0x40] sm:$0xff]  ;;  %v41_v11 = vld [vmem:[%s928_s3 + $0x38] sm:$0xff] }
   0x5   :  { %578 = vmatprep.subr.mxu1 %v48_v4  ;;  %v40_v12 = vld [vmem:[%s928_s3 + $0x30] sm:$0xff]  ;;  %v39_v13 = vld [vmem:[%s928_s3 + $0x28] sm:$0xff]  ;;  %v38_v14 = vld [vmem:[%s928_s3 + $0x20] sm:$0xff] }
   0x6   :  { %579 = vmatpush3.msra.mxu1 %v48_v4  ;;  %v37_v15 = vld [vmem:[%s928_s3 + $0x18] sm:$0xff]  ;;  %v36_v16 = vld [vmem:[%s928_s3 + $0x10] sm:$0xff]  ;;  %v35_v17 = vld [vmem:[%s928_s3 + $0x8] sm:$0xff] }
   0x7   :  { %580 = vmatprep.subr.mxu1 %v47_v5  ;;  %v34_v18 = vld [vmem:[%s928_s3] sm:$0xff]  ;;  %v66_v48 = vld [vmem:[%s930_s5 + $0x78] sm:$0xff]  ;;  %v65_v49 = vld [vmem:[%s930_s5 + $0x70] sm:$0xff] }
   0x8   :  { %581 = vmatpush3.msra.mxu1 %v47_v5  ;;  %v508_v19 = vld [vmem:[%s929_s2] ss:$0 sm:$0xff]  ;;  %611 = vmatprep.subr.mxu0 %v66_v48  ;;  %v64_v50 = vld [vmem:[%s930_s5 + $0x68] sm:$0xff]  ;;  %v62_v52 = vld [vmem:[%s930_s5 + $0x58] sm:$0xff] }
   0x9   :  { %582 = vmatprep.subr.mxu1 %v46_v6  ;;  %612 = vmatpush3.msra.mxu0 %v66_v48  ;;  %v63_v51 = vld [vmem:[%s930_s5 + $0x60] sm:$0xff]  ;;  %v61_v53 = vld [vmem:[%s930_s5 + $0x50] sm:$0xff]  ;;  %v60_v54 = vld [vmem:[%s930_s5 + $0x48] sm:$0xff] }
   0xa   :  { %583 = vmatpush3.msra.mxu1 %v46_v6  ;;  %613 = vmatprep.subr.mxu0 %v65_v49  ;;  %v59_v55 = vld [vmem:[%s930_s5 + $0x40] sm:$0xff]  ;;  %v58_v56 = vld [vmem:[%s930_s5 + $0x38] sm:$0xff]  ;;  %v57_v57 = vld [vmem:[%s930_s5 + $0x30] sm:$0xff] }
   0xb   :  { %584 = vmatprep.subr.mxu1 %v45_v7  ;;  %614 = vmatpush3.msra.mxu0 %v65_v49  ;;  %v56_v58 = vld [vmem:[%s930_s5 + $0x28] sm:$0xff]  ;;  %v55_v59 = vld [vmem:[%s930_s5 + $0x20] sm:$0xff]  ;;  %v54_v60 = vld [vmem:[%s930_s5 + $0x18] sm:$0xff] }
   0xc   :  { %585 = vmatpush3.msra.mxu1 %v45_v7  ;;  %615 = vmatprep.subr.mxu0 %v64_v50  ;;  %v53_v61 = vld [vmem:[%s930_s5 + $0x10] sm:$0xff]  ;;  %v52_v62 = vld [vmem:[%s930_s5 + $0x8] sm:$0xff]  ;;  %v51_v63 = vld [vmem:[%s930_s5] sm:$0xff] }
   0xd   :  { %586 = vmatprep.subr.mxu1 %v44_v8  ;;  %616 = vmatpush3.msra.mxu0 %v64_v50  ;;  %v511_v0 = vld [vmem:[%s931_s4] ss:$0 sm:$0xff] }
   0xe   :  { %587 = vmatpush3.msra.mxu1 %v44_v8  ;;  %617 = vmatprep.subr.mxu0 %v63_v51 }
   0xf   :  { %588 = vmatprep.subr.mxu1 %v43_v9  ;;  %618 = vmatpush3.msra.mxu0 %v63_v51 }
  0x10   :  { %589 = vmatpush3.msra.mxu1 %v43_v9  ;;  %619 = vmatprep.subr.mxu0 %v62_v52 }
  0x11   :  { %590 = vmatprep.subr.mxu1 %v42_v10  ;;  %620 = vmatpush3.msra.mxu0 %v62_v52 }
  0x12   :  { %591 = vmatpush3.msra.mxu1 %v42_v10  ;;  %621 = vmatprep.subr.mxu0 %v61_v53 }
  0x13   :  { %592 = vmatprep.subr.mxu1 %v41_v11  ;;  %622 = vmatpush3.msra.mxu0 %v61_v53 }
  0x14   :  { %593 = vmatpush3.msra.mxu1 %v41_v11  ;;  %623 = vmatprep.subr.mxu0 %v60_v54 }
  0x15   :  { %594 = vmatprep.subr.mxu1 %v40_v12  ;;  %624 = vmatpush3.msra.mxu0 %v60_v54 }
  0x16   :  { %595 = vmatpush3.msra.mxu1 %v40_v12  ;;  %625 = vmatprep.subr.mxu0 %v59_v55 }
  0x17   :  { %596 = vmatprep.subr.mxu1 %v39_v13  ;;  %626 = vmatpush3.msra.mxu0 %v59_v55 }
  0x18   :  { %597 = vmatpush3.msra.mxu1 %v39_v13  ;;  %627 = vmatprep.subr.mxu0 %v58_v56 }
  0x19   :  { %598 = vmatprep.subr.mxu1 %v38_v14  ;;  %628 = vmatpush3.msra.mxu0 %v58_v56 }
  0x1a   :  { %599 = vmatpush3.msra.mxu1 %v38_v14  ;;  %629 = vmatprep.subr.mxu0 %v57_v57 }
  0x1b   :  { %600 = vmatprep.subr.mxu1 %v37_v15  ;;  %630 = vmatpush3.msra.mxu0 %v57_v57 }
  0x1c   :  { %601 = vmatpush3.msra.mxu1 %v37_v15  ;;  %631 = vmatprep.subr.mxu0 %v56_v58 }
  0x1d   :  { %602 = vmatprep.subr.mxu1 %v36_v16  ;;  %632 = vmatpush3.msra.mxu0 %v56_v58 }
  0x1e   :  { %603 = vmatpush3.msra.mxu1 %v36_v16  ;;  %633 = vmatprep.subr.mxu0 %v55_v59 }
  0x1f   :  { %604 = vmatprep.subr.mxu1 %v35_v17  ;;  %634 = vmatpush3.msra.mxu0 %v55_v59 }
  0x20   :  { %605 = vmatpush3.msra.mxu1 %v35_v17  ;;  %635 = vmatprep.subr.mxu0 %v54_v60 }
  0x21   :  { %606 = vmatprep.subr.mxu1 %v34_v18  ;;  %636 = vmatpush3.msra.mxu0 %v54_v60 }
  0x22   :  { %607 = vmatpush3.msra.mxu1 %v34_v18  ;;  %637 = vmatprep.subr.mxu0 %v53_v61 }
  0x23   :  { %638 = vmatpush3.msra.mxu0 %v53_v61 }
  0x24   :  { %639 = vmatprep.subr.mxu0 %v52_v62 }
  0x25   :  { %640 = vmatpush3.msra.mxu0 %v52_v62 }
  0x26   :  { %641 = vmatprep.subr.mxu0 %v51_v63 }
  0x27   :  { %642 = vmatpush3.msra.mxu0 %v51_v63 }
  0xc4   :  { %v575_v20 = vpop.f32.mrf.mxu0 }
  0xc5   :  { %v172_v21 = vadd.f32 %v575_v20, %v508_v19 }
  0xc6   :  { %v166_v22 = vpop.f32.mrf.mxu0 }
  0xc7   :  { %v178_v23 = vmin.f32 %v172_v21, 20.0  ;;  %v167_v24 = vadd.f32 %v508_v19, %v166_v22  ;;  %vm176_vm4 = vcmp.gt.f32.partialorder %v172_v21, 20.0 }
  0xc9   :  { %v181_v25 = vmul.f32 1.442695, %v178_v23  ;;  %v177_v26 = vmin.f32 %v167_v24, 20.0  ;;  %vm175_vm3 = vcmp.gt.f32.partialorder %v167_v24, 20.0 }
  0xcb   :  { %681 = vpow2.f32 %v181_v25  ;;  %v179_v27 = vmul.f32 1.442695, %v177_v26 }
  0xcd   :  { %683 = vpow2.f32 %v179_v27 }
  0xd8   :  { %v682_v28 = vpop.eup %681 }
  0xd9   :  { %v192_v29 = vadd.f32 1.0, %v682_v28  ;;  %v195_v32 = vmul.f32 -0.5, %v682_v28  ;;  %v198_v36 = vand.u32 2147483647, %v682_v28 }
  0xda   :  { %v684_v30 = vpop.eup %683 }
  0xdb   :  { %v183_v31 = vadd.f32 1.0, %v684_v30  ;;  %685 = vlog2.f32 %v192_v29  ;;  %v186_v33 = vmul.f32 -0.5, %v684_v30  ;;  %v196_v34 = vadd.f32 1.0, %v195_v32  ;;  %v83_v29 = vld [vmem:[%s932_s7 + $0x78] sm:$0xff]  ;;  %v80_v32 = vld [vmem:[%s932_s7 + $0x60] sm:$0xff] }
  0xdc   :  { %v189_v38 = vand.u32 2147483647, %v684_v30  ;;  %vm199_vm1 = vcmp.lt.f32.partialorder %v198_v36, 0.0004427343  ;;  %646 = vmatprep.subr.mxu1 %v83_v29  ;;  %v76_v36 = vld [vmem:[%s932_s7 + $0x40] sm:$0xff] }
  0xdd   :  { %687 = vlog2.f32 %v183_v31  ;;  %v187_v35 = vadd.f32 1.0, %v186_v33  ;;  %v197_v41 = vmul.f32 %v682_v28, %v196_v34  ;;  %v81_v31 = vld [vmem:[%s932_s7 + $0x68] sm:$0xff]  ;;  %v79_v33 = vld [vmem:[%s932_s7 + $0x58] sm:$0xff]  ;;  %v78_v34 = vld [vmem:[%s932_s7 + $0x50] sm:$0xff] }
  0xde   :  { %vm190_vm2 = vcmp.lt.f32.partialorder %v189_v38, 0.0004427343  ;;  %v74_v38 = vld [vmem:[%s932_s7 + $0x30] sm:$0xff] }
  0xdf   :  { %v188_v43 = vmul.f32 %v684_v30, %v187_v35  ;;  %v82_v30 = vld [vmem:[%s932_s7 + $0x70] sm:$0xff]  ;;  %v77_v35 = vld [vmem:[%s932_s7 + $0x48] sm:$0xff] }
  0xe8   :  { %v686_v37 = vpop.eup %685 }
  0xe9   :  { %v194_v39 = vmul.f32 0.6931472, %v686_v37  ;;  %v75_v37 = vld [vmem:[%s932_s7 + $0x38] sm:$0xff] }
  0xea   :  { %v688_v40 = vpop.eup %687 }
  0xeb   :  { %v185_v42 = vmul.f32 0.6931472, %v688_v40  ;;  %v200_v44 = vsel %vm199_vm1, %v197_v41, %v194_v39  ;;  %v73_v39 = vld [vmem:[%s932_s7 + $0x28] sm:$0xff]  ;;  %v72_v40 = vld [vmem:[%s932_s7 + $0x20] sm:$0xff]  ;;  %v71_v41 = vld [vmem:[%s932_s7 + $0x18] sm:$0xff] }
  0xec   :  { %v202_v47 = vsel %vm176_vm4, %v172_v21, %v200_v44  ;;  %v68_v44 = vld [vmem:[%s932_s7] sm:$0xff] }
  0xed   :  { %v191_v45 = vsel %vm190_vm2, %v188_v43, %v185_v42  ;;  %v70_v42 = vld [vmem:[%s932_s7 + $0x10] sm:$0xff]  ;;  %v69_v43 = vld [vmem:[%s932_s7 + $0x8] sm:$0xff] }
  0xee   :  { %v201_v46 = vsel %vm175_vm3, %v167_v24, %v191_v45  ;;  %v512_v45 = vld [vmem:[%s933_s6] ss:$0 sm:$0xff] }
  0xef   :  { %608 = vmatprep.mubr.f32.mxu1 %v201_v46 }
  0xf0   :  { %609 = vmatmul.mubr.f32.vlgmr.msra.gmra.mxu1 %v202_v47 }
  0xf1   :  { %647 = vmatpush3.msra.mxu1 %v83_v29 }
  0xf2   :  { %648 = vmatprep.subr.mxu1 %v82_v30 }
  0xf3   :  { %649 = vmatpush3.msra.mxu1 %v82_v30 }
  0xf4   :  { %650 = vmatprep.subr.mxu1 %v81_v31 }
  0xf5   :  { %651 = vmatpush3.msra.mxu1 %v81_v31 }
  0xf6   :  { %652 = vmatprep.subr.mxu1 %v80_v32 }
  0xf7   :  { %653 = vmatpush3.msra.mxu1 %v80_v32 }
  0xf8   :  { %654 = vmatprep.subr.mxu1 %v79_v33 }
  0xf9   :  { %655 = vmatpush3.msra.mxu1 %v79_v33 }
  0xfa   :  { %656 = vmatprep.subr.mxu1 %v78_v34 }
  0xfb   :  { %657 = vmatpush3.msra.mxu1 %v78_v34 }
  0xfc   :  { %658 = vmatprep.subr.mxu1 %v77_v35 }
  0xfd   :  { %659 = vmatpush3.msra.mxu1 %v77_v35 }
  0xfe   :  { %660 = vmatprep.subr.mxu1 %v76_v36 }
  0xff   :  { %661 = vmatpush3.msra.mxu1 %v76_v36 }
 0x100   :  { %662 = vmatprep.subr.mxu1 %v75_v37 }
 0x101   :  { %663 = vmatpush3.msra.mxu1 %v75_v37 }
 0x102   :  { %664 = vmatprep.subr.mxu1 %v74_v38 }
 0x103   :  { %665 = vmatpush3.msra.mxu1 %v74_v38 }
 0x104   :  { %666 = vmatprep.subr.mxu1 %v73_v39 }
 0x105   :  { %667 = vmatpush3.msra.mxu1 %v73_v39 }
 0x106   :  { %668 = vmatprep.subr.mxu1 %v72_v40 }
 0x107   :  { %669 = vmatpush3.msra.mxu1 %v72_v40 }
 0x108   :  { %670 = vmatprep.subr.mxu1 %v71_v41 }
 0x109   :  { %671 = vmatpush3.msra.mxu1 %v71_v41 }
 0x10a   :  { %672 = vmatprep.subr.mxu1 %v70_v42 }
 0x10b   :  { %673 = vmatpush3.msra.mxu1 %v70_v42 }
 0x10c   :  { %674 = vmatprep.subr.mxu1 %v69_v43 }
 0x10d   :  { %675 = vmatpush3.msra.mxu1 %v69_v43 }
 0x10e   :  { %676 = vmatprep.subr.mxu1 %v68_v44 }
 0x10f   :  { %677 = vmatpush3.msra.mxu1 %v68_v44 }
 0x1b0   :  { %v610_v1 = vpop.f32.mrf.mxu1 }
 0x1b1   :  { %v281_v2 = vadd.f32 %v610_v1, %v511_v0 }
 0x1b2   :  { %v275_v3 = vpop.f32.mrf.mxu1 }
 0x1b3   :  { %v287_v4 = vmin.f32 %v281_v2, 20.0  ;;  %v276_v5 = vadd.f32 %v511_v0, %v275_v3  ;;  %vm285_vm8 = vcmp.gt.f32.partialorder %v281_v2, 20.0 }
 0x1b5   :  { %v290_v6 = vmul.f32 1.442695, %v287_v4  ;;  %v286_v7 = vmin.f32 %v276_v5, 20.0  ;;  %vm284_vm7 = vcmp.gt.f32.partialorder %v276_v5, 20.0 }
 0x1b7   :  { %689 = vpow2.f32 %v290_v6  ;;  %v288_v8 = vmul.f32 1.442695, %v286_v7 }
 0x1b9   :  { %691 = vpow2.f32 %v288_v8 }
 0x1c4   :  { %v690_v9 = vpop.eup %689 }
 0x1c5   :  { %v301_v10 = vadd.f32 1.0, %v690_v9  ;;  %v304_v13 = vmul.f32 -0.5, %v690_v9  ;;  %v307_v17 = vand.u32 2147483647, %v690_v9 }
 0x1c6   :  { %v692_v11 = vpop.eup %691 }
 0x1c7   :  { %v292_v12 = vadd.f32 1.0, %v692_v11  ;;  %693 = vlog2.f32 %v301_v10  ;;  %v295_v14 = vmul.f32 -0.5, %v692_v11  ;;  %v305_v15 = vadd.f32 1.0, %v304_v13  ;;  %v513_v10 = vld [vmem:[%s934_s8] ss:$0 sm:$0xff] }
 0x1c8   :  { %v298_v19 = vand.u32 2147483647, %v692_v11  ;;  %vm308_vm5 = vcmp.lt.f32.partialorder %v307_v17, 0.0004427343 }
 0x1c9   :  { %695 = vlog2.f32 %v292_v12  ;;  %v296_v16 = vadd.f32 1.0, %v295_v14  ;;  %v306_v22 = vmul.f32 %v690_v9, %v305_v15 }
 0x1ca   :  { %vm299_vm6 = vcmp.lt.f32.partialorder %v298_v19, 0.0004427343 }
 0x1cb   :  { %v297_v24 = vmul.f32 %v692_v11, %v296_v16 }
 0x1d4   :  { %v694_v18 = vpop.eup %693 }
 0x1d5   :  { %v303_v20 = vmul.f32 0.6931472, %v694_v18 }
 0x1d6   :  { %v696_v21 = vpop.eup %695 }
 0x1d7   :  { %v294_v23 = vmul.f32 0.6931472, %v696_v21  ;;  %v309_v25 = vsel %vm308_vm5, %v306_v22, %v303_v20 }
 0x1d8   :  { %v311_v28 = vsel %vm285_vm8, %v281_v2, %v309_v25 }
 0x1d9   :  { %v300_v26 = vsel %vm299_vm6, %v297_v24, %v294_v23 }
 0x1da   :  { %v310_v27 = vsel %vm284_vm7, %v276_v5, %v300_v26 }
 0x1db   :  { %643 = vmatprep.mubr.f32.mxu0 %v310_v27 }
 0x1dc   :  { %644 = vmatmul.mubr.f32.vlgmr.msra.gmra.mxu0 %v311_v28 }
 0x29c   :  { %v645_v46 = vpop.f32.mrf.mxu0 }
 0x29d   :  { %v390_v47 = vadd.f32 %v645_v46, %v512_v45 }
 0x29e   :  { %v384_v48 = vpop.f32.mrf.mxu0 }
 0x29f   :  { %v396_v49 = vmin.f32 %v390_v47, 20.0  ;;  %v385_v50 = vadd.f32 %v512_v45, %v384_v48  ;;  %vm394_vm12 = vcmp.gt.f32.partialorder %v390_v47, 20.0 }
 0x2a1   :  { %v399_v51 = vmul.f32 1.442695, %v396_v49  ;;  %v395_v52 = vmin.f32 %v385_v50, 20.0  ;;  %vm393_vm11 = vcmp.gt.f32.partialorder %v385_v50, 20.0 }
 0x2a3   :  { %697 = vpow2.f32 %v399_v51  ;;  %v397_v53 = vmul.f32 1.442695, %v395_v52 }
 0x2a5   :  { %699 = vpow2.f32 %v397_v53 }
 0x2b0   :  { %v698_v54 = vpop.eup %697 }
 0x2b1   :  { %v410_v55 = vadd.f32 1.0, %v698_v54  ;;  %v413_v58 = vmul.f32 -0.5, %v698_v54  ;;  %v416_v62 = vand.u32 2147483647, %v698_v54 }
 0x2b2   :  { %v700_v56 = vpop.eup %699 }
 0x2b3   :  { %v401_v57 = vadd.f32 1.0, %v700_v56  ;;  %701 = vlog2.f32 %v410_v55  ;;  %v404_v59 = vmul.f32 -0.5, %v700_v56  ;;  %v414_v60 = vadd.f32 1.0, %v413_v58 }
 0x2b4   :  { %v407_v0 = vand.u32 2147483647, %v700_v56  ;;  %vm417_vm9 = vcmp.lt.f32.partialorder %v416_v62, 0.0004427343 }
 0x2b5   :  { %703 = vlog2.f32 %v401_v57  ;;  %v405_v61 = vadd.f32 1.0, %v404_v59  ;;  %v415_v3 = vmul.f32 %v698_v54, %v414_v60 }
 0x2b6   :  { %vm408_vm10 = vcmp.lt.f32.partialorder %v407_v0, 0.0004427343 }
 0x2b7   :  { %v406_v5 = vmul.f32 %v700_v56, %v405_v61 }
 0x2c0   :  { %v702_v63 = vpop.eup %701 }
 0x2c1   :  { %v412_v1 = vmul.f32 0.6931472, %v702_v63 }
 0x2c2   :  { %v704_v2 = vpop.eup %703 }
 0x2c3   :  { %v403_v4 = vmul.f32 0.6931472, %v704_v2  ;;  %v418_v6 = vsel %vm417_vm9, %v415_v3, %v412_v1 }
 0x2c4   :  { %v420_v9 = vsel %vm394_vm12, %v390_v47, %v418_v6 }
 0x2c5   :  { %v409_v7 = vsel %vm408_vm10, %v406_v5, %v403_v4 }
 0x2c6   :  { %v419_v8 = vsel %vm393_vm11, %v385_v50, %v409_v7 }
 0x2c7   :  { %678 = vmatprep.mubr.f32.mxu1 %v419_v8 }
 0x2c8   :  { %679 = vmatmul.mubr.f32.vlgmr.msra.gmra.mxu1 %v420_v9 }
 0x388   :  { %v680_v11 = vpop.f32.mrf.mxu1 }
 0x389   :  { %v499_v12 = vadd.f32 %v680_v11, %v513_v10 }
 0x38a   :  { %v493_v13 = vpop.f32.mrf.mxu1 }
 0x38b   :  { %503 = vst [vmem:[%s935_s9 + $0x8] sm:$0xff] %v499_v12  ;;  %v494_v14 = vadd.f32 %v513_v10, %v493_v13 }
 0x38d   :  { %502 = vst [vmem:[%s935_s9] sm:$0xff] %v494_v14 }

</bundles_post_ra>
